<compile_context>
chip_gen: v6e
topology: v6e:2x2x1
jax: 0.10.0
libtpu: 0.0.40
codegen_flags: <defaults>
</compile_context>

<pallas_src>
import functools

import numpy as np
import jax
import jax.numpy as jnp
from jax.experimental import pallas as pl
from jax.experimental.pallas import tpu as pltpu


def _round_up(x, m):
    return (x + m - 1) // m * m


# ----------------------------------------------------------------------------
# Kernel: per (batch tile, time tile) grid step -- in-kernel im2col + single
# K-fused matmul, masked fold into a running max-pool scratch, and (on the
# last time tile) hoisted bias/ReLU + classifier matmul.
# ----------------------------------------------------------------------------
def _make_kernel(ts, max_fs, k_true, k_pad, n_cols):
    def kernel(emb_ref, wconv_ref, bconv_ref, nvalid_ref, lin_w_ref, lin_b_ref,
               out_ref, runmax_ref):
        t = pl.program_id(1)

        @pl.when(t == 0)
        def _init():
            runmax_ref[...] = jnp.full_like(runmax_ref, -jnp.inf)

        tb = emb_ref.shape[0]
        emb = emb_ref[...]                               # [TB, TS+max_fs-1, D] bf16

        # In-kernel im2col over the haloed time window: one lane-/K-dense
        # matmul covers ALL filter sizes and offsets (shorter filters have
        # zero-padded weight rows for offsets o >= fs).
        parts = [emb[:, o:o + ts, :] for o in range(max_fs)]
        if k_pad > k_true:
            parts.append(jnp.zeros((tb, ts, k_pad - k_true), emb.dtype))
        x = jnp.concatenate(parts, axis=-1)              # [TB, TS, K_pad] bf16
        conv = jnp.dot(x.reshape(tb * ts, k_pad), wconv_ref[...],
                       preferred_element_type=jnp.float32)
        conv = conv.reshape(tb, ts, n_cols)              # [TB, TS, N_pad] f32

        # 2-D validity mask: global window index vs per-column #valid windows.
        t_idx = jax.lax.broadcasted_iota(jnp.int32, (ts, 1), 0) + t * ts
        mask = t_idx < nvalid_ref[...]                   # (TS, n_cols) bool
        conv = jnp.where(mask[None, :, :], conv, -jnp.inf)

        # Fold this time tile into the running max-pool.
        runmax_ref[...] = jnp.maximum(runmax_ref[...], jnp.max(conv, axis=1))

        @pl.when(t == pl.num_programs(1) - 1)
        def _finalize():
            # Bias + ReLU hoisted past the max: exact for a per-column constant
            # bias and a monotone nonlinearity.
            act = jnp.maximum(runmax_ref[...] + bconv_ref[...], 0.0)
            # Classifier (dropout = identity in eval mode), lane-dense output.
            out = jnp.dot(act.astype(lin_w_ref.dtype), lin_w_ref[...],
                          preferred_element_type=jnp.float32) + lin_b_ref[...]
            out_ref[...] = out.astype(out_ref.dtype)

    return kernel


def conv_classifier_forward(text, params, *, filter_sizes, n_filters, output_dim,
                            batch_tile=None, time_tile=None):
    """text: int32 [B, S] token ids. Returns float32 [B, output_dim]."""
    filter_sizes = tuple(filter_sizes)
    B, S = text.shape
    max_fs = max(filter_sizes)
    assert S >= max_fs, "sequence shorter than the largest filter size"

    emb_table = params["embedding"]                        # [V, D]
    D = emb_table.shape[1]
    F = n_filters
    n_true = len(filter_sizes) * F
    n_cols = _round_up(max(n_true, 128), 128)              # lane-dense filter axis
    out_cols = _round_up(max(output_dim, 128), 128)        # lane-dense output
    k_true = max_fs * D
    k_pad = _round_up(max(k_true, 128), 128)               # fused contraction dim

    # --- Embedding gather (glue; stays in XLA). ------------------------------
    # TODO(synk): fuse the gather into the kernel (scalar-prefetched token ids +
    # manual DMA row gather from the HBM table) to remove this HBM round trip.
    emb = jnp.take(emb_table, text, axis=0).astype(jnp.bfloat16)   # [B, S, D]

    # --- Tile selection --------------------------------------------------------
    B8 = _round_up(B, 8)
    if batch_tile is not None:
        TB = batch_tile
    elif B8 <= 8:
        TB = 8
    elif B8 <= 128:
        TB = _round_up(B8 // 2, 8)       # >=2 batch steps -> both v7x cores busy
    else:
        TB = 64
    B_pad = _round_up(B, TB)

    if time_tile is not None:
        TS = time_tile
    else:
        TS = min(128, _round_up(S, 8))   # bounds per-step VMEM working set
    S_t = _round_up(S, TS)               # padded number of window positions
    n_time = S_t // TS
    TS_block = TS + max_fs - 1           # rows each time tile needs (with halo)

    # --- Pad + pre-tile the embedded activations ------------------------------
    emb = jnp.pad(emb, ((0, B_pad - B), (0, S_t + max_fs - 1 - S), (0, 0)))
    # Haloed time tiles so each grid step reads a plain rectangular block.
    # TODO(synk): replace with an overlapping-window BlockSpec / in-kernel DMA
    # gather to avoid the extra HBM materialization of the (small) halo copy.
    emb_tiles = jnp.stack(
        [emb[:, t * TS:t * TS + TS_block, :] for t in range(n_time)], axis=1)
    # emb_tiles: [B_pad, n_time, TS_block, D] bf16

    # --- Fused, lane-dense parameter layout -----------------------------------
    wconv = jnp.zeros((k_pad, n_cols), jnp.float32)        # [max_fs*D (pad), N_pad]
    bconv = jnp.zeros((1, n_cols), jnp.float32)
    col_fs = np.ones((n_cols,), np.int32)                  # padded cols act like fs=1
    for idx, fs in enumerate(filter_sizes):
        w = params[f"conv_w_{fs}"]                         # torch layout [F, fs, D]
        b = params[f"conv_b_{fs}"]
        lo = idx * F
        for o in range(fs):
            wconv = wconv.at[o * D:(o + 1) * D, lo:lo + F].set(
                jnp.transpose(w[:, o, :]))
        bconv = bconv.at[0, lo:lo + F].set(b)
        col_fs[lo:lo + F] = fs
    wconv = wconv.astype(jnp.bfloat16)
    nvalid = jnp.asarray((S - col_fs + 1).reshape(1, n_cols), dtype=jnp.int32)

    lin_w = jnp.zeros((n_cols, out_cols), jnp.float32)
    lin_w = lin_w.at[:n_true, :output_dim].set(jnp.transpose(params["lin_w"]))
    lin_w = lin_w.astype(jnp.bfloat16)
    lin_b = jnp.zeros((1, out_cols), jnp.float32)
    lin_b = lin_b.at[0, :output_dim].set(params["lin_b"])

    # --- Explicit VMEM budget (v5e default scoped = 16 MiB; v7x phys = 64 MiB) --
    est = (2 * (TB * TS_block * D * 2                        # emb tile, double buffer
                + (k_pad * n_cols + n_cols * out_cols) * 2   # bf16 weights
                + (2 * n_cols + out_cols) * 4                # biases / nvalid
                + TB * out_cols * 4)                         # output tile
           + TB * n_cols * 4                                 # running-max scratch
           + 2 * TB * TS * (k_pad * 2 + n_cols * 4))         # im2col + conv temps
    vmem_limit = int(min(max(2 * est, 16 * 1024 * 1024), 48 * 1024 * 1024))

    # --- Pallas call -----------------------------------------------------------
    kernel = _make_kernel(TS, max_fs, k_true, k_pad, n_cols)
    grid = (B_pad // TB, n_time)                    # reduction (time) axis last

    out_padded = pl.pallas_call(
        kernel,
        grid=grid,
        in_specs=[
            pl.BlockSpec((TB, None, TS_block, D), lambda b, t: (b, t, 0, 0)),
            pl.BlockSpec((k_pad, n_cols), lambda b, t: (0, 0)),
            pl.BlockSpec((1, n_cols), lambda b, t: (0, 0)),
            pl.BlockSpec((1, n_cols), lambda b, t: (0, 0)),
            pl.BlockSpec((n_cols, out_cols), lambda b, t: (0, 0)),
            pl.BlockSpec((1, out_cols), lambda b, t: (0, 0)),
        ],
        out_specs=pl.BlockSpec((TB, out_cols), lambda b, t: (b, 0)),
        out_shape=jax.ShapeDtypeStruct((B_pad, out_cols), jnp.float32),
        scratch_shapes=[pltpu.VMEM((TB, n_cols), jnp.float32)],
        compiler_params=pltpu.CompilerParams(
            dimension_semantics=("parallel", "arbitrary"),
            vmem_limit_bytes=vmem_limit),
    )(emb_tiles, wconv, bconv, nvalid, lin_w, lin_b)

    return out_padded[:B, :output_dim]


# ----------------------------------------------------------------------------
# Deterministic parameter initialization (torch-like shapes):
#   embedding [V, D]; conv weight [F, fs, D] (in_channels=1 squeezed), bias [F];
#   linear weight [out, n_fs*F], bias [out].
# ----------------------------------------------------------------------------
def init_params(key, *, size_vocab, embedding_dim, n_filters, filter_sizes,
                output_dim, pad_ix=0):
    filter_sizes = tuple(filter_sizes)
    keys = jax.random.split(key, 2 + 2 * len(filter_sizes) + 2)
    ki = iter(keys)

    emb = jax.random.normal(next(ki), (size_vocab, embedding_dim), jnp.float32)
    emb = emb.at[pad_ix].set(0.0)                  # nn.Embedding padding_idx row

    params = {"embedding": emb}
    for fs in filter_sizes:
        params[f"conv_w_{fs}"] = 0.1 * jax.random.normal(
            next(ki), (n_filters, fs, embedding_dim), jnp.float32)
        params[f"conv_b_{fs}"] = 0.1 * jax.random.normal(
            next(ki), (n_filters,), jnp.float32)

    in_feats = len(filter_sizes) * n_filters
    params["lin_w"] = 0.1 * jax.random.normal(
        next(ki), (output_dim, in_feats), jnp.float32)          # torch [out, in]
    params["lin_b"] = 0.1 * jax.random.normal(
        next(ki), (output_dim,), jnp.float32)
    return params


# Pure-JAX reference of the module's forward, mirroring the kernel's precision
# policy (bf16-rounded inputs, f32 accumulation) so the check is tight.
def reference_forward(text, params, *, filter_sizes, n_filters, output_dim):
    def bf(x):
        return x.astype(jnp.bfloat16).astype(jnp.float32)

    emb = bf(jnp.take(params["embedding"], text, axis=0))       # [B, S, D]
    B, S, D = emb.shape
    pooled_parts = []
    for fs in filter_sizes:
        w = bf(params[f"conv_w_{fs}"])                          # [F, fs, D]
        b = params[f"conv_b_{fs}"]
        conv = jnp.stack(
            [jnp.einsum("bod,fod->bf", emb[:, t:t + fs, :], w)
             for t in range(S - fs + 1)], axis=1)               # [B, L, F]
        act = jax.nn.relu(conv + b[None, None, :])
        pooled_parts.append(jnp.max(act, axis=1))               # [B, F]
    cat = bf(jnp.concatenate(pooled_parts, axis=1))             # kernel rounds act to bf16
    return cat @ bf(params["lin_w"]).T + params["lin_b"][None, :]


if __name__ == "__main__":
    SIZE_VOCAB = 50
    EMBEDDING_DIM = 32
    N_FILTERS = 8
    FILTER_SIZES = (2, 3, 4)
    OUTPUT_DIM = 1
    BATCH = 2
    SEQ = 8

    key = jax.random.PRNGKey(0)
    pkey, tkey = jax.random.split(key)

    params = init_params(pkey, size_vocab=SIZE_VOCAB, embedding_dim=EMBEDDING_DIM,
                         n_filters=N_FILTERS, filter_sizes=FILTER_SIZES,
                         output_dim=OUTPUT_DIM, pad_ix=0)

    text = jax.random.randint(tkey, (BATCH, SEQ), 0, SIZE_VOCAB, dtype=jnp.int32)

    fwd = functools.partial(conv_classifier_forward, filter_sizes=FILTER_SIZES,
                            n_filters=N_FILTERS, output_dim=OUTPUT_DIM)
    out = jax.jit(lambda t: fwd(t, params))(text)
    out = jax.block_until_ready(out)

    ref = reference_forward(text, params, filter_sizes=FILTER_SIZES,
                            n_filters=N_FILTERS, output_dim=OUTPUT_DIM)
    assert out.shape == (BATCH, OUTPUT_DIM)
    assert jnp.allclose(out, ref, atol=2e-3, rtol=2e-3), (out, ref)

    print("KERNEL_OK")
</pallas_src>

<mosaic_0001>
module attributes {stable_mosaic.version = 11 : i64} {
  func.func @kernel(%arg0: i32, %arg1: i32, %arg2: memref<8x1x11x32xbf16, #tpu.memory_space<vmem>>, %arg3: memref<128x128xbf16, #tpu.memory_space<vmem>>, %arg4: memref<1x128xf32, #tpu.memory_space<vmem>>, %arg5: memref<1x128xi32, #tpu.memory_space<vmem>>, %arg6: memref<128x128xbf16, #tpu.memory_space<vmem>>, %arg7: memref<1x128xf32, #tpu.memory_space<vmem>>, %arg8: memref<8x128xf32, #tpu.memory_space<vmem>>, %arg9: memref<8x128xf32, #tpu.memory_space<vmem>>) attributes {dimension_semantics = [#tpu.dimension_semantics<parallel>, #tpu.dimension_semantics<arbitrary>], iteration_bounds = array<i64: 1, 1>, scalar_prefetch = 0 : i64, scratch_operands = 1 : i64, tpu.core_type = #tpu.core_type<tc>, window_params = [{transform_indices = @transform_0, window_bounds = array<i64: 8, 1, 11, 32>}, {pipeline_mode = #tpu.pipeline_mode<synchronous>, transform_indices = @transform_1, window_bounds = array<i64: 128, 128>}, {pipeline_mode = #tpu.pipeline_mode<synchronous>, transform_indices = @transform_2, window_bounds = array<i64: 1, 128>}, {pipeline_mode = #tpu.pipeline_mode<synchronous>, transform_indices = @transform_3, window_bounds = array<i64: 1, 128>}, {pipeline_mode = #tpu.pipeline_mode<synchronous>, transform_indices = @transform_4, window_bounds = array<i64: 128, 128>}, {pipeline_mode = #tpu.pipeline_mode<synchronous>, transform_indices = @transform_5, window_bounds = array<i64: 1, 128>}, {transform_indices = @transform_6, window_bounds = array<i64: 8, 128>}]} {
    %c0_i32 = arith.constant 0 : i32
    %0 = arith.cmpi eq, %arg1, %c0_i32 : i32
    %1 = arith.extui %0 : i1 to i32
    %c0_i32_0 = arith.constant 0 : i32
    %2 = arith.cmpi ne, %1, %c0_i32_0 : i32
    scf.if %2 {
      %cst_16 = arith.constant 0xFF800000 : f32
      %34 = vector.broadcast %cst_16 : f32 to vector<8x128xf32>
      %c0_17 = arith.constant 0 : index
      %c0_18 = arith.constant 0 : index
      %35 = vector.load %arg9[%c0_17, %c0_18] : memref<8x128xf32, #tpu.memory_space<vmem>>, vector<8x128xf32>
      tpu.vector_store %arg9[%c0_17, %c0_18], %34 {strides = array<i32>} : memref<8x128xf32, #tpu.memory_space<vmem>>, vector<8x128xf32>,
    } else {
    }
    %c0 = arith.constant 0 : index
    %c0_1 = arith.constant 0 : index
    %c0_2 = arith.constant 0 : index
    %c0_3 = arith.constant 0 : index
    %3 = vector.load %arg2[%c0, %c0_1, %c0_2, %c0_3] : memref<8x1x11x32xbf16, #tpu.memory_space<vmem>>, vector<8x1x11x32xbf16>
    %4 = vector.shape_cast %3 : vector<8x1x11x32xbf16> to vector<8x11x32xbf16>
    %5 = vector.extract_strided_slice %4 {offsets = [0, 0, 0], sizes = [8, 8, 32], strides = [1, 1, 1]} : vector<8x11x32xbf16> to vector<8x8x32xbf16>
    %6 = vector.extract_strided_slice %4 {offsets = [0, 1, 0], sizes = [8, 8, 32], strides = [1, 1, 1]} : vector<8x11x32xbf16> to vector<8x8x32xbf16>
    %7 = vector.extract_strided_slice %4 {offsets = [0, 2, 0], sizes = [8, 8, 32], strides = [1, 1, 1]} : vector<8x11x32xbf16> to vector<8x8x32xbf16>
    %8 = vector.extract_strided_slice %4 {offsets = [0, 3, 0], sizes = [8, 8, 32], strides = [1, 1, 1]} : vector<8x11x32xbf16> to vector<8x8x32xbf16>
    %9 = tpu.concatenate %5, %6, %7, %8 in 2 : vector<8x8x32xbf16>, vector<8x8x32xbf16>, vector<8x8x32xbf16>, vector<8x8x32xbf16> -> vector<8x8x128xbf16>
    %10 = vector.shape_cast %9 : vector<8x8x128xbf16> to vector<64x128xbf16>
    %c0_4 = arith.constant 0 : index
    %c0_5 = arith.constant 0 : index
    %11 = vector.load %arg3[%c0_4, %c0_5] : memref<128x128xbf16, #tpu.memory_space<vmem>>, vector<128x128xbf16>
    %cst = arith.constant dense<0.000000e+00> : vector<64x128xf32>
    %12 = tpu.matmul %10, %11, %cst {dimension_numbers = #tpu.dot_dimension_numbers<[1], [0], [0], [1], [0, 0, 1, 1], [], []>} : vector<64x128xbf16>, vector<128x128xbf16>, vector<64x128xf32> -> vector<64x128xf32>
    %13 = vector.shape_cast %12 : vector<64x128xf32> to vector<8x8x128xf32>
    %14 = tpu.iota {dimensions = array<i32: 0>} : vector<8x1xi32>
    %c8_i32 = arith.constant 8 : i32
    %15 = arith.muli %arg1, %c8_i32 : i32
    %16 = vector.broadcast %15 : i32 to vector<8x1xi32>
    %17 = arith.addi %14, %16 : vector<8x1xi32>
    %c0_6 = arith.constant 0 : index
    %c0_7 = arith.constant 0 : index
    %18 = vector.load %arg5[%c0_6, %c0_7] : memref<1x128xi32, #tpu.memory_space<vmem>>, vector<1x128xi32>
    %19 = vector.broadcast %17 : vector<8x1xi32> to vector<8x128xi32>
    %20 = vector.broadcast %18 : vector<1x128xi32> to vector<8x128xi32>
    %21 = arith.cmpi slt, %19, %20 : vector<8x128xi32>
    %22 = vector.shape_cast %21 : vector<8x128xi1> to vector<1x8x128xi1>
    %cst_8 = arith.constant 0xFF800000 : f32
    %23 = vector.shape_cast %22 : vector<1x8x128xi1> to vector<1x8x128xi1>
    %24 = vector.broadcast %23 : vector<1x8x128xi1> to vector<8x8x128xi1>
    %25 = vector.broadcast %cst_8 : f32 to vector<8x8x128xf32>
    %26 = arith.select %24, %13, %25 : vector<8x8x128xi1>, vector<8x8x128xf32>
    %c0_9 = arith.constant 0 : index
    %c0_10 = arith.constant 0 : index
    %27 = vector.load %arg9[%c0_9, %c0_10] : memref<8x128xf32, #tpu.memory_space<vmem>>, vector<8x128xf32>
    %cst_11 = arith.constant dense<0xFF800000> : vector<8x128xf32>
    %28 = vector.multi_reduction <maximumf>, %26, %cst_11 [1] : vector<8x8x128xf32> to vector<8x128xf32>
    %29 = arith.maximumf %27, %28 : vector<8x128xf32>
    %c0_12 = arith.constant 0 : index
    %c0_13 = arith.constant 0 : index
    %30 = vector.load %arg9[%c0_12, %c0_13] : memref<8x128xf32, #tpu.memory_space<vmem>>, vector<8x128xf32>
    tpu.vector_store %arg9[%c0_12, %c0_13], %29 {strides = array<i32>} : memref<8x128xf32, #tpu.memory_space<vmem>>, vector<8x128xf32>,
    %c0_i32_14 = arith.constant 0 : i32
    %31 = arith.cmpi eq, %arg1, %c0_i32_14 : i32
    %32 = arith.extui %31 : i1 to i32
    %c0_i32_15 = arith.constant 0 : i32
    %33 = arith.cmpi ne, %32, %c0_i32_15 : i32
    scf.if %33 {
      %c0_16 = arith.constant 0 : index
      %c0_17 = arith.constant 0 : index
      %34 = vector.load %arg9[%c0_16, %c0_17] : memref<8x128xf32, #tpu.memory_space<vmem>>, vector<8x128xf32>
      %c0_18 = arith.constant 0 : index
      %c0_19 = arith.constant 0 : index
      %35 = vector.load %arg4[%c0_18, %c0_19] : memref<1x128xf32, #tpu.memory_space<vmem>>, vector<1x128xf32>
      %36 = vector.broadcast %35 : vector<1x128xf32> to vector<8x128xf32>
      %37 = arith.addf %34, %36 : vector<8x128xf32>
      %cst_20 = arith.constant 0.000000e+00 : f32
      %38 = vector.broadcast %cst_20 : f32 to vector<8x128xf32>
      %39 = arith.maximumf %37, %38 : vector<8x128xf32>
      %40 = arith.truncf %39 : vector<8x128xf32> to vector<8x128xbf16>
      %c0_21 = arith.constant 0 : index
      %c0_22 = arith.constant 0 : index
      %41 = vector.load %arg6[%c0_21, %c0_22] : memref<128x128xbf16, #tpu.memory_space<vmem>>, vector<128x128xbf16>
      %cst_23 = arith.constant dense<0.000000e+00> : vector<8x128xf32>
      %42 = tpu.matmul %40, %41, %cst_23 {dimension_numbers = #tpu.dot_dimension_numbers<[1], [0], [0], [1], [0, 0, 1, 1], [], []>} : vector<8x128xbf16>, vector<128x128xbf16>, vector<8x128xf32> -> vector<8x128xf32>
      %c0_24 = arith.constant 0 : index
      %c0_25 = arith.constant 0 : index
      %43 = vector.load %arg7[%c0_24, %c0_25] : memref<1x128xf32, #tpu.memory_space<vmem>>, vector<1x128xf32>
      %44 = vector.broadcast %43 : vector<1x128xf32> to vector<8x128xf32>
      %45 = arith.addf %42, %44 : vector<8x128xf32>
      %c0_26 = arith.constant 0 : index
      %c0_27 = arith.constant 0 : index
      %46 = vector.load %arg8[%c0_26, %c0_27] : memref<8x128xf32, #tpu.memory_space<vmem>>, vector<8x128xf32>
      tpu.vector_store %arg8[%c0_26, %c0_27], %45 {strides = array<i32>} : memref<8x128xf32, #tpu.memory_space<vmem>>, vector<8x128xf32>,
    } else {
    }
    return
  }
  func.func @transform_0(%arg0: i32, %arg1: i32) -> (i32, i32, i32, i32) {
    %c0_i32 = arith.constant 0 : i32
    %c0_i32_0 = arith.constant 0 : i32
    %c0_i32_1 = arith.constant 0 : i32
    return %arg0, %arg1, %c0_i32, %c0_i32_0 : i32, i32, i32, i32
  }
  func.func @transform_1(%arg0: i32, %arg1: i32) -> (i32, i32) {
    %c0_i32 = arith.constant 0 : i32
    %c0_i32_0 = arith.constant 0 : i32
    %c0_i32_1 = arith.constant 0 : i32
    return %c0_i32, %c0_i32_0 : i32, i32
  }
  func.func @transform_2(%arg0: i32, %arg1: i32) -> (i32, i32) {
    %c0_i32 = arith.constant 0 : i32
    %c0_i32_0 = arith.constant 0 : i32
    %c0_i32_1 = arith.constant 0 : i32
    return %c0_i32, %c0_i32_0 : i32, i32
  }
  func.func @transform_3(%arg0: i32, %arg1: i32) -> (i32, i32) {
    %c0_i32 = arith.constant 0 : i32
    %c0_i32_0 = arith.constant 0 : i32
    %c0_i32_1 = arith.constant 0 : i32
    return %c0_i32, %c0_i32_0 : i32, i32
  }
  func.func @transform_4(%arg0: i32, %arg1: i32) -> (i32, i32) {
    %c0_i32 = arith.constant 0 : i32
    %c0_i32_0 = arith.constant 0 : i32
    %c0_i32_1 = arith.constant 0 : i32
    return %c0_i32, %c0_i32_0 : i32, i32
  }
  func.func @transform_5(%arg0: i32, %arg1: i32) -> (i32, i32) {
    %c0_i32 = arith.constant 0 : i32
    %c0_i32_0 = arith.constant 0 : i32
    %c0_i32_1 = arith.constant 0 : i32
    return %c0_i32, %c0_i32_0 : i32, i32
  }
  func.func @transform_6(%arg0: i32, %arg1: i32) -> (i32, i32) {
    %c0_i32 = arith.constant 0 : i32
    %c0_i32_0 = arith.constant 0 : i32
    return %arg0, %c0_i32 : i32, i32
  }
}

</mosaic_0001>

<bundles_post_ra>
// kernel: _lambda_.1
= control target key start
LH: loop header
LB: loop body
LE: loop exit
PB: predicated region body
PF: predicated region fallthrough
CT: control target
= control target key end

     0   :  { %s783_s17 = smov 64   ;;  %s784_s24 = smov 32   ;;  %vm221_vm0 = vcmask 261120   ;;  %vm246_vm1 = vcmask 523264   ;;  %vm263_vm2 = vcmask 785408   ;;  %vm787_vm3 = vmmov 0   ;;  %s1041_s0 = inlined_call_operand.vmem [shape: bf16[8,1,11,32], index: 0, kind: input, shape index: {}]   ;;  %s1042_s1 = inlined_call_operand.vmem [shape: bf16[128,128], index: 1, kind: input, shape index: {}]   ;;  %s1043_s4 = inlined_call_operand.vmem [shape: bf16[128,128], index: 4, kind: input, shape index: {}]   ;;  %s1044_s3 = inlined_call_operand.vmem [shape: s32[1,128], index: 3, kind: input, shape index: {}]   ;;  %s1045_s2 = inlined_call_operand.vmem [shape: f32[1,128], index: 2, kind: input, shape index: {}]   ;;  %s1046_s5 = inlined_call_operand.vmem [shape: f32[1,128], index: 5, kind: input, shape index: {}]   ;;  %s1047_s6 = inlined_call_operand.vmem [shape: f32[8,128], index: 6, kind: output, shape index: {}]  }
   0x1   :  { %v826_v0 = vld [vmem:[%s1041_s0 + $0x8] sm:$0xf]  ;;  %v32_v1 = vld [vmem:[%s1041_s0 + $0xc] sm:$0x3]  ;;  %v834_v2 = vld [vmem:[%s1041_s0] sm:$0xf] }
   0x2   :  { %v659_v3 = vcombine.low %v826_v0, %v32_v1  ;;  %v30_v4 = vld [vmem:[%s1041_s0 + $0x4] sm:$0x3]  ;;  %v843_v5 = vld [vmem:[%s1041_s0 + $0x10] sm:$0xf]  ;;  %v34_v6 = vld [vmem:[%s1041_s0 + $0x14] sm:$0x3] }
   0x3   :  { %v658_v7 = vcombine.low %v834_v2, %v30_v4  ;;  %v850_v8 = vcombine.low %v843_v5, %v34_v6  ;;  %v855_v9 = vld [vmem:[%s1041_s0 + $0x18] sm:$0xf]  ;;  %v36_v10 = vld [vmem:[%s1041_s0 + $0x1c] sm:$0x3]  ;;  %v768_v15 = vld [vmem:[%s1042_s1 + $0x30] sm:$0xff]   ;;  %vm511_vm5 = vcmask 1041409  }
   0x4   :  { %v767_v11 = vld [vmem:[%s1042_s1 + $0x38] sm:$0xff]   ;;  %v158_v12 = vrot.slane %v659_v3, 1  ;;  %v661_v13 = vcombine.low %v855_v9, %v36_v10  ;;  %v95_v14 = vshll.u32 %v659_v3, 16  ;;  %v93_v26 = vshrl.u32 %v659_v3, 16  ;;  %v769_v28 = vld [vmem:[%s1042_s1 + $0x28] sm:$0xff]   ;;  %v770_v34 = vld [vmem:[%s1042_s1 + $0x20] sm:$0xff]  }
   0x5   :  { %v157_v16 = vrot.slane %v658_v7, 1  ;;  %v100_v17 = vshrl.u32 %v850_v8, 16  ;;  %v102_v18 = vshll.u32 %v850_v8, 16  ;;  %710 = vmatprep.subr.bf16.mxu0 %v767_v11  ;;  %v86_v19 = vshrl.u32 %v658_v7, 16  ;;  %v877_v31 = vld [vmem:[%s1041_s0 + $0x28] sm:$0xf] }
   0x6   :  { %167 = vrot.lane.b32.xlu1 %v158_v12, %s783_s17  ;;  %v88_v20 = vshll.u32 %v658_v7, 16  ;;  %v109_v21 = vshll.u32 %v661_v13, 16  ;;  %711 = vmatpush3.bf16.msra.mxu0 %v767_v11  ;;  %v107_v23 = vshrl.u32 %v661_v13, 16  ;;  %v97_v27 = vrot.slane %v95_v14, 1  ;;  %v40_v32 = vld [vmem:[%s1041_s0 + $0x2c] sm:$0x3] }
   0x7   :  { %165 = vrot.lane.b32.xlu0 %v157_v16, %s783_s17  ;;  %v104_v22 = vrot.slane %v102_v18, 1  ;;  %712 = vmatprep.subr.bf16.mxu0 %v768_v15  ;;  %v890_v36 = vld [vmem:[%s1041_s0 + $0x20] sm:$0xf]  ;;  %v38_v37 = vld [vmem:[%s1041_s0 + $0x24] sm:$0x3]  ;;  %v160_v38 = vrot.slane %v661_v13, 1  ;;  %v898_v43 = vcombine.low %v877_v31, %v40_v32 }
   0x8   :  { %v90_v24 = vrot.slane %v88_v20, 1  ;;  %v111_v25 = vrot.slane %v109_v21, 1  ;;  %v98_v35 = vor.u32 %v97_v27, %v93_v26  ;;  %v159_v39 = vrot.slane %v850_v8, 1  ;;  %v903_v44 = vld [vmem:[%s1041_s0 + $0x38] sm:$0xf]  ;;  %v772_v57 = vld [vmem:[%s1042_s1 + $0x10] sm:$0xff]  }
   0x9   :  { %v105_v29 = vor.u32 %v104_v22, %v100_v17  ;;  %v184_v40 = vrot.slane %v93_v26, 1  ;;  %v185_v41 = vrot.slane %v95_v14, 2  ;;  %v181_v42 = vrot.slane %v86_v19, 1  ;;  %v771_v45 = vld [vmem:[%s1042_s1 + $0x18] sm:$0xff]   ;;  %v916_v50 = vld [vmem:[%s1041_s0 + $0x30] sm:$0xf] }
   0xa   :  { %v91_v30 = vor.u32 %v90_v24, %v86_v19  ;;  %713 = vmatpush3.bf16.msra.mxu0 %v768_v15  ;;  %v112_v33 = vor.u32 %v111_v25, %v107_v23  ;;  %v182_v46 = vrot.slane %v88_v20, 2  ;;  %v190_v47 = vrot.slane %v107_v23, 1  ;;  %v44_v49 = vld [vmem:[%s1041_s0 + $0x3c] sm:$0x3]  ;;  %v42_v51 = vld [vmem:[%s1041_s0 + $0x34] sm:$0x3] }
   0xb   :  { %145 = vrot.lane.b32.xlu1 %v105_v29, %s784_s24  ;;  %714 = vmatprep.subr.bf16.mxu0 %v769_v28  ;;  %v662_v48 = vcombine.low %v890_v36, %v38_v37  ;;  %v191_v52 = vrot.slane %v109_v21, 2  ;;  %v187_v53 = vrot.slane %v100_v17, 1  ;;  %v186_v54 = vor.u32 %v185_v41, %v184_v40  ;;  %s785_s0 = smov 96   ;;  %v773_v4 = vld [vmem:[%s1042_s1 + $0x8] sm:$0xff]   ;;  %v774_v14 = vld [vmem:[%s1042_s1] sm:$0xff]  }
   0xc   :  { %141 = vrot.lane.b32.xlu0 %v91_v30, %s784_s24  ;;  %v123_v55 = vshll.u32 %v898_v43, 16  ;;  %v665_v56 = vcombine.low %v903_v44, %v44_v49  ;;  %v183_v58 = vor.u32 %v182_v46, %v181_v42  ;;  %v188_v59 = vrot.slane %v102_v18, 2 }
   0xd   :  { %v116_v60 = vshll.u32 %v662_v48, 16  ;;  %v664_v61 = vcombine.low %v916_v50, %v42_v51  ;;  %v192_v62 = vor.u32 %v191_v52, %v190_v47  ;;  %v121_v63 = vshrl.u32 %v898_v43, 16 }
   0xe   :  { %715 = vmatpush3.bf16.msra.mxu0 %v769_v28  ;;  %v125_v1 = vrot.slane %v123_v55, 1  ;;  %v137_v3 = vshll.u32 %v665_v56, 16  ;;  %v189_v6 = vor.u32 %v188_v59, %v187_v53  ;;  %v114_v7 = vshrl.u32 %v662_v48, 16 }
   0xf   :  { %147 = vrot.lane.b32.xlu1 %v112_v33, %s784_s24  ;;  %716 = vmatprep.subr.bf16.mxu0 %v770_v34  ;;  %v118_v8 = vrot.slane %v116_v60, 1  ;;  %v130_v10 = vshll.u32 %v664_v61, 16  ;;  %v135_v12 = vshrl.u32 %v665_v56, 16  ;;  %v128_v16 = vshrl.u32 %v664_v61, 16 }
  0x10   :  { %143 = vrot.lane.b32.xlu0 %v98_v35, %s784_s24  ;;  %v126_v11 = vor.u32 %v125_v1, %v121_v63  ;;  %v139_v13 = vrot.slane %v137_v3, 1  ;;  %v162_v20 = vrot.slane %v898_v43, 1  ;;  %v161_v21 = vrot.slane %v662_v48, 1 }
  0x11   :  { %v119_v15 = vor.u32 %v118_v8, %v114_v7  ;;  %v132_v17 = vrot.slane %v130_v10, 1  ;;  %v164_v22 = vrot.slane %v665_v56, 1  ;;  %v196_v23 = vrot.slane %v121_v63, 1 }
  0x12   :  { %717 = vmatpush3.bf16.msra.mxu0 %v770_v34  ;;  %v140_v18 = vor.u32 %v139_v13, %v135_v12  ;;  %v197_v24 = vrot.slane %v123_v55, 2  ;;  %v163_v25 = vrot.slane %v664_v61, 1  ;;  %v193_v26 = vrot.slane %v114_v7, 1 }
  0x13   :  { %171 = vrot.lane.b32.xlu1 %v160_v38, %s783_s17  ;;  %718 = vmatprep.subr.bf16.mxu0 %v771_v45  ;;  %v133_v19 = vor.u32 %v132_v17, %v128_v16  ;;  %v194_v27 = vrot.slane %v116_v60, 2  ;;  %v202_v29 = vrot.slane %v135_v12, 1  ;;  %v203_v30 = vrot.slane %v137_v3, 2 }
  0x14   :  { %169 = vrot.lane.b32.xlu0 %v159_v39, %s783_s17  ;;  %v198_v28 = vor.u32 %v197_v24, %v196_v23  ;;  %v199_v33 = vrot.slane %v128_v16, 1  ;;  %v200_v34 = vrot.slane %v130_v10, 2  ;;  %vm513_vm6 = vcmask 1042434  }
  0x15   :  { %v195_v32 = vor.u32 %v194_v27, %v193_v26  ;;  %v204_v35 = vor.u32 %v203_v30, %v202_v29  ;;  %v786_v26 = vmov 0.0   ;;  %v777_v27 = vld [vmem:[%s1043_s4 + $0x28] sm:$0xff]   ;;  %v779_v29 = vld [vmem:[%s1043_s4 + $0x18] sm:$0xff]   ;;  %v780_v30 = vld [vmem:[%s1043_s4 + $0x10] sm:$0xff]   ;;  %vm515_vm7 = vcmask 1043459  }
  0x16   :  { %719 = vmatpush3.bf16.msra.mxu0 %v771_v45  ;;  %v201_v37 = vor.u32 %v200_v34, %v199_v33  ;;  %734 = vmatprep.subr.bf16.mxu1 %v786_v26  ;;  %v782_v33 = vld [vmem:[%s1043_s4] sm:$0xff]   ;;  %vm517_vm8 = vcmask 1044484   ;;  %vm519_vm9 = vcmask 1045509   ;;  %vm521_vm10 = vcmask 1046534  }
  0x17   :  { %207 = vrot.lane.b32.xlu1 %v186_v54, %s785_s0  ;;  %720 = vmatprep.subr.bf16.mxu0 %v772_v57  ;;  %vm523_vm11 = vcmask 1047559  }
  0x18   :  { %205 = vrot.lane.b32.xlu0 %v183_v58, %s785_s0  ;;  %750 = vmatprep.mubr.msk.bf16.mxu1 %vm787_vm3, %v786_v26 }
  0x1a   :  { %721 = vmatpush3.bf16.msra.mxu0 %v772_v57 }
  0x1b   :  { %211 = vrot.lane.b32.xlu1 %v192_v62, %s785_s0  ;;  %722 = vmatprep.subr.bf16.mxu0 %v773_v4 }
  0x1c   :  { %209 = vrot.lane.b32.xlu0 %v189_v6, %s785_s0 }
  0x1e   :  { %723 = vmatpush3.bf16.msra.mxu0 %v773_v4 }
  0x1f   :  { %151 = vrot.lane.b32.xlu1 %v126_v11, %s784_s24  ;;  %724 = vmatprep.subr.bf16.mxu0 %v774_v14 }
  0x20   :  { %149 = vrot.lane.b32.xlu0 %v119_v15, %s784_s24 }
  0x22   :  { %725 = vmatpush3.bf16.msra.mxu0 %v774_v14 }
  0x23   :  { %155 = vrot.lane.b32.xlu1 %v140_v18, %s784_s24 }
  0x24   :  { %153 = vrot.lane.b32.xlu0 %v133_v19, %s784_s24 }
  0x27   :  { %175 = vrot.lane.b32.xlu1 %v162_v20, %s783_s17 }
  0x28   :  { %173 = vrot.lane.b32.xlu0 %v161_v21, %s783_s17 }
  0x2b   :  { %179 = vrot.lane.b32.xlu1 %v164_v22, %s783_s17 }
  0x2c   :  { %177 = vrot.lane.b32.xlu0 %v163_v25, %s783_s17 }
  0x2f   :  { %215 = vrot.lane.b32.xlu1 %v198_v28, %s785_s0  ;;  %v778_v28 = vld [vmem:[%s1043_s4 + $0x20] sm:$0xff]  }
  0x30   :  { %213 = vrot.lane.b32.xlu0 %v195_v32, %s785_s0  ;;  %v781_v32 = vld [vmem:[%s1043_s4 + $0x8] sm:$0xff]  }
  0x33   :  { %219 = vrot.lane.b32.xlu1 %v204_v35, %s785_s0  ;;  %v433_v35 = vlaneseq }
  0x34   :  { %217 = vrot.lane.b32.xlu0 %v201_v37, %s785_s0 }
  0x78   :  { %v168_v38 = vpop.permute.xlu1 %167 }
  0x79   :  { %v166_v39 = vpop.permute.xlu0 %165 }
  0x7d   :  { %v146_v40 = vpop.permute.xlu1 %145 }
  0x7e   :  { %v142_v41 = vpop.permute.xlu0 %141  ;;  %v230_v57 = vsel %vm221_vm0, %v843_v5, %v146_v40  ;;  %v678_v40 = vld [vmem:[%s1044_s3] ss:$0 sm:$0xff] }
  0x7f   :  { %v224_v48 = vsel %vm221_vm0, %v834_v2, %v142_v41 }
  0x80   :  { %v248_v53 = vsel %vm246_vm1, %v224_v48, %v166_v39 }
  0x81   :  { %v148_v42 = vpop.permute.xlu1 %147 }
  0x82   :  { %v144_v43 = vpop.permute.xlu0 %143  ;;  %v233_v56 = vsel %vm221_vm0, %v855_v9, %v148_v42 }
  0x83   :  { %v227_v46 = vsel %vm221_vm0, %v826_v0, %v144_v43 }
  0x84   :  { %v250_v51 = vsel %vm246_vm1, %v227_v46, %v168_v38  ;;  %v434_v38 = vshrl.u32 %v433_v35, 7 }
  0x85   :  { %v172_v45 = vpop.permute.xlu1 %171 }
  0x86   :  { %v170_v47 = vpop.permute.xlu0 %169  ;;  %v254_v2 = vsel %vm246_vm1, %v233_v56, %v172_v45  ;;  %vm1012_vm4 = vcmp.lt.s32.totalorder %v434_v38, %v678_v40 }
  0x87   :  { %v252_v59 = vsel %vm246_vm1, %v230_v57, %v170_v47 }
  0x89   :  { %v208_v49 = vpop.permute.xlu1 %207 }
  0x8a   :  { %v206_v52 = vpop.permute.xlu0 %205  ;;  %v267_v54 = vsel %vm263_vm2, %v250_v51, %v208_v49 }
  0x8b   :  { %v265_v55 = vsel %vm263_vm2, %v248_v53, %v206_v52 }
  0x8c   :  { %v666_v0 = vcombine.low %v265_v55, %v267_v54 }
  0x8d   :  { %v212_v58 = vpop.permute.xlu1 %211 }
  0x8e   :  { %v271_v60 = vsel %vm263_vm2, %v254_v2, %v212_v58  ;;  %726 = vmatprep.mubr.bf16.mxu0 %v666_v0  ;;  %v210_v61 = vpop.permute.xlu0 %209 }
  0x8f   :  { %v269_v62 = vsel %vm263_vm2, %v252_v59, %v210_v61 }
  0x90   :  { %v667_v63 = vcombine.low %v269_v62, %v271_v60 }
  0x91   :  { %v152_v1 = vpop.permute.xlu1 %151 }
  0x92   :  { %727 = vmatmul.mubr.bf16.vlgmr.msra.gmra.mxu0 %v667_v63  ;;  %v150_v3 = vpop.permute.xlu0 %149  ;;  %v239_v10 = vsel %vm221_vm0, %v877_v31, %v152_v1 }
  0x93   :  { %v236_v11 = vsel %vm221_vm0, %v890_v36, %v150_v3 }
  0x95   :  { %v156_v9 = vpop.permute.xlu1 %155 }
  0x96   :  { %v154_v4 = vpop.permute.xlu0 %153  ;;  %v245_v18 = vsel %vm221_vm0, %v903_v44, %v156_v9  ;;  %v775_v44 = vld [vmem:[%s1043_s4 + $0x38] sm:$0xff]  }
  0x97   :  { %v242_v31 = vsel %vm221_vm0, %v916_v50, %v154_v4  ;;  %735 = vmatpush3.bf16.msra.mxu1 %v775_v44  ;;  %v776_v50 = vld [vmem:[%s1043_s4 + $0x30] sm:$0xff]  }
  0x98   :  { %736 = vmatprep.subr.bf16.mxu1 %v786_v26 }
  0x99   :  { %v176_v6 = vpop.permute.xlu1 %175 }
  0x9a   :  { %v174_v7 = vpop.permute.xlu0 %173  ;;  %v258_v12 = vsel %vm246_vm1, %v239_v10, %v176_v6 }
  0x9b   :  { %v256_v14 = vsel %vm246_vm1, %v236_v11, %v174_v7  ;;  %737 = vmatpush3.bf16.msra.mxu1 %v776_v50 }
  0x9c   :  { %738 = vmatprep.subr.bf16.mxu1 %v786_v26 }
  0x9d   :  { %v180_v5 = vpop.permute.xlu1 %179 }
  0x9e   :  { %v178_v8 = vpop.permute.xlu0 %177  ;;  %v262_v20 = vsel %vm246_vm1, %v245_v18, %v180_v5 }
  0x9f   :  { %v260_v21 = vsel %vm246_vm1, %v242_v31, %v178_v8  ;;  %739 = vmatpush3.bf16.msra.mxu1 %v777_v27 }
  0xa0   :  { %740 = vmatprep.subr.bf16.mxu1 %v786_v26 }
  0xa1   :  { %v216_v13 = vpop.permute.xlu1 %215 }
  0xa2   :  { %v275_v15 = vsel %vm263_vm2, %v258_v12, %v216_v13  ;;  %v214_v16 = vpop.permute.xlu0 %213 }
  0xa3   :  { %v273_v17 = vsel %vm263_vm2, %v256_v14, %v214_v16  ;;  %741 = vmatpush3.bf16.msra.mxu1 %v778_v28 }
  0xa4   :  { %v668_v19 = vcombine.low %v273_v17, %v275_v15  ;;  %742 = vmatprep.subr.bf16.mxu1 %v786_v26 }
  0xa5   :  { %v220_v36 = vpop.permute.xlu1 %219 }
  0xa6   :  { %v279_v22 = vsel %vm263_vm2, %v262_v20, %v220_v36  ;;  %730 = vmatprep.mubr.bf16.mxu0 %v668_v19  ;;  %v218_v23 = vpop.permute.xlu0 %217 }
  0xa7   :  { %v277_v24 = vsel %vm263_vm2, %v260_v21, %v218_v23  ;;  %743 = vmatpush3.bf16.msra.mxu1 %v779_v29 }
  0xa8   :  { %v669_v25 = vcombine.low %v277_v24, %v279_v22  ;;  %744 = vmatprep.subr.bf16.mxu1 %v786_v26 }
  0xaa   :  { %731 = vmatmul.mubr.bf16.gmra.mxu0 %v669_v25 }
  0xab   :  { %745 = vmatpush3.bf16.msra.mxu1 %v780_v30 }
  0xac   :  { %746 = vmatprep.subr.bf16.mxu1 %v786_v26 }
  0xaf   :  { %747 = vmatpush3.bf16.msra.mxu1 %v781_v32 }
  0xb0   :  { %748 = vmatprep.subr.bf16.mxu1 %v786_v26 }
  0xb3   :  { %749 = vmatpush3.bf16.msra.mxu1 %v782_v33 }
 0x152   :  { %v728_v34 = vpop.f32.mrf.mxu0 }
 0x153   :  { %v448_v47 = vsel %vm1012_vm4, %v728_v34, -inf }
 0x154   :  { %v402_v37 = vpop.f32.mrf.mxu0  ;;  %v467_v52 = vrot.slane %v448_v47, 4 }
 0x155   :  { %v446_v45 = vsel %vm1012_vm4, %v402_v37, -inf }
 0x156   :  { %v729_v39 = vpop.f32.mrf.mxu0  ;;  %v455_v48 = vrot.slane %v446_v45, 4  ;;  %v468_v56 = vmax.f32 %v448_v47, %v467_v52  ;;  %v680_v52 = vld [vmem:[%s1046_s5] ss:$0 sm:$0xff] }
 0x157   :  { %v449_v49 = vsel %vm1012_vm4, %v729_v39, -inf }
 0x158   :  { %v405_v41 = vpop.f32.mrf.mxu0  ;;  %v456_v53 = vmax.f32 %v446_v45, %v455_v48  ;;  %v473_v54 = vrot.slane %v449_v49, 4  ;;  %v469_v59 = vrot.slane %v468_v56, 2  ;;  %v679_v45 = vld [vmem:[%s1045_s2] ss:$0 sm:$0xff] }
 0x159   :  { %v447_v43 = vsel %vm1012_vm4, %v405_v41, -inf }
 0x15a   :  { %v461_v46 = vrot.slane %v447_v43, 4  ;;  %v457_v0 = vrot.slane %v456_v53, 2  ;;  %v474_v57 = vmax.f32 %v449_v49, %v473_v54  ;;  %v470_v5 = vmax.f32 %v468_v56, %v469_v59 }
 0x15c   :  { %v462_v51 = vmax.f32 %v447_v43, %v461_v46  ;;  %v458_v61 = vmax.f32 %v456_v53, %v457_v0  ;;  %v475_v1 = vrot.slane %v474_v57, 2  ;;  %v471_v20 = vrot.slane %v470_v5, 1 }
 0x15e   :  { %v463_v55 = vrot.slane %v462_v51, 2  ;;  %v459_v10 = vrot.slane %v458_v61, 1  ;;  %v476_v14 = vmax.f32 %v474_v57, %v475_v1  ;;  %v472_v28 = vmax.f32 %v470_v5, %v471_v20 }
 0x160   :  { %v464_v2 = vmax.f32 %v462_v51, %v463_v55  ;;  %v460_v36 = vmax.f32 %v458_v61, %v459_v10  ;;  %v477_v24 = vrot.slane %v476_v14, 1 }
 0x162   :  { %v465_v9 = vrot.slane %v464_v2, 1  ;;  %v478_v34 = vmax.f32 %v476_v14, %v477_v24 }
 0x164   :  { %v466_v17 = vmax.f32 %v464_v2, %v465_v9 }
 0x166   :  { %v512_v26 = vsel %vm511_vm5, %v466_v17, %v460_v36 }
 0x167   :  { %v514_v30 = vsel %vm513_vm6, %v472_v28, %v512_v26 }
 0x168   :  { %v516_v38 = vsel %vm515_vm7, %v478_v34, %v514_v30 }
 0x16a   :  { %v732_v58 = vpop.f32.mrf.mxu0 }
 0x16b   :  { %v452_v60 = vsel %vm1012_vm4, %v732_v58, -inf }
 0x16c   :  { %v491_v62 = vrot.slane %v452_v60, 4  ;;  %v418_v63 = vpop.f32.mrf.mxu0 }
 0x16d   :  { %v450_v3 = vsel %vm1012_vm4, %v418_v63, -inf }
 0x16e   :  { %v492_v4 = vmax.f32 %v452_v60, %v491_v62  ;;  %v479_v6 = vrot.slane %v450_v3, 4  ;;  %v733_v7 = vpop.f32.mrf.mxu0 }
 0x16f   :  { %v453_v8 = vsel %vm1012_vm4, %v733_v7, -inf }
 0x170   :  { %v480_v11 = vmax.f32 %v450_v3, %v479_v6  ;;  %v497_v12 = vrot.slane %v453_v8, 4  ;;  %v421_v13 = vpop.f32.mrf.mxu0  ;;  %v493_v15 = vrot.slane %v492_v4, 2 }
 0x171   :  { %v451_v16 = vsel %vm1012_vm4, %v421_v13, -inf }
 0x172   :  { %v481_v18 = vrot.slane %v480_v11, 2  ;;  %v498_v19 = vmax.f32 %v453_v8, %v497_v12  ;;  %v485_v31 = vrot.slane %v451_v16, 4  ;;  %v494_v25 = vmax.f32 %v492_v4, %v493_v15 }
 0x174   :  { %v482_v21 = vmax.f32 %v480_v11, %v481_v18  ;;  %v499_v22 = vrot.slane %v498_v19, 2  ;;  %v486_v23 = vmax.f32 %v451_v16, %v485_v31  ;;  %v495_v32 = vrot.slane %v494_v25, 1 }
 0x176   :  { %v483_v44 = vrot.slane %v482_v21, 1  ;;  %v500_v50 = vmax.f32 %v498_v19, %v499_v22  ;;  %v487_v27 = vrot.slane %v486_v23, 2  ;;  %v496_v40 = vmax.f32 %v494_v25, %v495_v32 }
 0x178   :  { %v488_v29 = vmax.f32 %v486_v23, %v487_v27  ;;  %v484_v33 = vmax.f32 %v482_v21, %v483_v44  ;;  %v501_v35 = vrot.slane %v500_v50, 1 }
 0x17a   :  { %v489_v37 = vrot.slane %v488_v29, 1  ;;  %v518_v41 = vsel %vm517_vm8, %v484_v33, %v516_v38  ;;  %v502_v42 = vmax.f32 %v500_v50, %v501_v35 }
 0x17c   :  { %v490_v39 = vmax.f32 %v488_v29, %v489_v37 }
 0x17e   :  { %v520_v43 = vsel %vm519_vm9, %v490_v39, %v518_v41 }
 0x17f   :  { %v522_v46 = vsel %vm521_vm10, %v496_v40, %v520_v43 }
 0x180   :  { %v524_v47 = vsel %vm523_vm11, %v502_v42, %v522_v46 }
 0x181   :  { %v539_v48 = vadd.f32 %v679_v45, %v524_v47 }
 0x183   :  { %v540_v49 = vmax.f32 %v539_v48, 0.0 }
 0x185   :  { %v541_v51 = vpack.c.bf16 %v540_v49, %v540_v49 }
 0x187   :  { %751 = vmatmul.mubr.bf16.vlgmr.msra.gmra.mxu1 %v541_v51 }
 0x247   :  { %v647_v53 = vpop.f32.mrf.mxu1 }
 0x248   :  { %v648_v54 = vadd.f32 %v680_v52, %v647_v53 }
 0x249   :  { %v752_v55 = vpop.f32.mrf.mxu1 }
 0x24a   :  { %653 = vst [vmem:[%s1047_s6] sm:$0xff] %v648_v54 }
 0x24b   :  { %v650_v56 = vpop.f32.mrf.mxu1 }
 0x24d   :  { %v753_v0 = vpop.f32.mrf.mxu1 }

</bundles_post_ra>
